<compile_context>
chip_gen: v7x
topology: tpu7x:2x2x1
jax: 0.10.0
libtpu: 0.0.40
codegen_flags: <defaults>
</compile_context>

<pallas_src>
import math

import jax
import jax.numpy as jnp
from jax import lax
from jax.experimental import pallas as pl
from jax.experimental.pallas import tpu as pltpu

# ---- module hyper-parameters (SphereFacePlus.__init__) ----
FEAT_DIM = 32
NUM_CLASS = 16
BATCH = 8
S = 30.0
M = 1.5              # margin; the in-kernel closed form below is the exact m=1.5 case
LAMBDA_MHE = 1.0
EPS_CLAMP = 1e-5     # clamp used before acos in the reference
EPS_NORM = 1e-12     # F.normalize default eps
PI = math.pi

# Abramowitz & Stegun 4.4.46:  acos(a) ~= sqrt(1-a) * poly(a),  0 <= a <= 1, |err| <= 2e-8
_ACOS_COEFFS = (1.5707963050, -0.2145988016, 0.0889789874, -0.0501743046,
                0.0308918810, -0.0170881256, 0.0066700901, -0.0012624911)


def _acos(x):
    """acos for x in [-1+eps, 1-eps] using only mul/add/sqrt/where (guaranteed Mosaic ops)."""
    a = jnp.abs(x)
    p = jnp.full_like(a, _ACOS_COEFFS[-1])
    for c in reversed(_ACOS_COEFFS[:-1]):
        p = p * a + c
    pos = jnp.sqrt(1.0 - a) * p
    return jnp.where(x < 0.0, PI - pos, pos)


# ---------------------------------------------------------------------------
# Fused kernel: normalize -> matmuls -> margin -> CE + MHE -> scalar loss
# ---------------------------------------------------------------------------
def _sphereface_plus_kernel(x_ref, w_ref, ysub_ref, ylane_ref, out_ref):
    x = x_ref[...]            # (B, D) f32
    w = w_ref[...]            # (D, C) f32
    ysub = ysub_ref[...]      # (B, 1) i32
    ylane = ylane_ref[...]    # (1, B) i32
    B, _ = x.shape
    C = w.shape[1]

    # --- L2 normalization (rsqrt lands on the otherwise-idle EUP slot) ---
    # F.normalize(w, dim=0) / F.normalize(x, dim=1):  v / max(||v||, eps)
    w_inv = lax.rsqrt(jnp.maximum(jnp.sum(w * w, axis=0, keepdims=True), EPS_NORM * EPS_NORM))
    w_norm = w * w_inv                                                  # (D, C)
    x_inv = lax.rsqrt(jnp.maximum(jnp.sum(x * x, axis=1, keepdims=True), EPS_NORM * EPS_NORM))
    x_norm = x * x_inv                                                  # (B, D)

    # --- MXU matmuls ---
    cos_theta = jnp.dot(x_norm, w_norm, preferred_element_type=jnp.float32)    # (B, C)
    gram = lax.dot_general(w_norm, w_norm,                                      # wn^T @ wn
                           dimension_numbers=(((0,), (0,)), ((), ())),
                           preferred_element_type=jnp.float32)                  # (C, C)

    # --- one_hot / present-class masks built in-kernel from y (no host-side tensors) ---
    col_ids = lax.broadcasted_iota(jnp.int32, (B, C), 1)
    onehot_b = (col_ids == ysub)                                        # (B, C) bool
    onehot = onehot_b.astype(jnp.float32)
    pres_lane = (jnp.sum(onehot, axis=0, keepdims=True) > 0.0).astype(jnp.float32)   # (1, C)
    cls_ids = lax.broadcasted_iota(jnp.int32, (C, B), 0)
    pres_sub = (jnp.sum((cls_ids == ylane).astype(jnp.float32), axis=1, keepdims=True) > 0.0
                ).astype(jnp.float32)                                   # (C, 1)
    n_u = jnp.sum(pres_lane, axis=1, keepdims=True)                     # (1, 1)

    # --- angular margin (m = 1.5 exact closed form; matches acos/cos/floor reference path) ---
    c = jnp.clip(cos_theta, -1.0 + EPS_CLAMP, 1.0 - EPS_CLAMP)
    cos_m_theta = (2.0 * c - 1.0) * jnp.sqrt((1.0 + c) * 0.5)           # cos(1.5*acos(c)), exact
    k = (c <= -0.5).astype(jnp.float32)                                 # k = floor(1.5*theta/pi)
    phi_tgt = (1.0 - 2.0 * k) * cos_m_theta - 2.0 * k                   # sign*cos(m*theta) - 2k
    # cos_theta + d_theta == phi  (phi = cos(theta)=c for non-target rows/cols)
    phi = jnp.where(onehot_b, phi_tgt, c)
    logits = S * phi                                                    # (B, C)

    # --- numerically stable cross-entropy with mean reduction ---
    row_max = jnp.max(logits, axis=1, keepdims=True)                    # (B, 1)
    lse = jnp.log(jnp.sum(jnp.exp(logits - row_max), axis=1, keepdims=True)) + row_max
    tgt = jnp.sum(logits * onehot, axis=1, keepdims=True)               # (B, 1)
    ce = jnp.sum(lse - tgt, axis=0, keepdims=True) * (1.0 / B)          # (1, 1)

    # --- MHE over strictly-upper-triangular pairs of present classes ---
    g = _acos(jnp.clip(gram, -1.0 + EPS_CLAMP, 1.0 - EPS_CLAMP))        # (C, C) angles
    rid = lax.broadcasted_iota(jnp.int32, (C, C), 0)
    cid = lax.broadcasted_iota(jnp.int32, (C, C), 1)
    triu = (cid > rid).astype(jnp.float32)
    masked = triu * pres_sub * pres_lane * pl.reciprocal(g * g, approx=True)   # pow(g, -2)
    mhe_sum = jnp.sum(jnp.sum(masked, axis=1, keepdims=True), axis=0, keepdims=True)  # (1, 1)
    # guard n_u < 2 (reference would produce NaN there; masked sum is 0 anyway)
    denom = jnp.maximum(n_u * (n_u - 1.0) * 0.5, 1.0)
    mhe = mhe_sum * pl.reciprocal(denom, approx=True)                   # (1, 1)

    out_ref[...] = ce + LAMBDA_MHE * mhe                                # (1, 1)


# ---------------------------------------------------------------------------
# Wrapper
# ---------------------------------------------------------------------------
@jax.jit
def sphereface_plus_loss(x, w, y):
    B, _ = x.shape
    vmem = pl.BlockSpec(memory_space=pltpu.MemorySpace.VMEM)

    ysub = y.reshape(B, 1).astype(jnp.int32)    # y along sublanes (for one_hot / CE)
    ylane = y.reshape(1, B).astype(jnp.int32)   # y along lanes (for row-oriented presence)

    loss = pl.pallas_call(
        _sphereface_plus_kernel,
        out_shape=jax.ShapeDtypeStruct((1, 1), jnp.float32),
        in_specs=[vmem, vmem, vmem, vmem],
        out_specs=vmem,
    )(x, w, ysub, ylane)
    return loss[0, 0]


# ---------------------------------------------------------------------------
# Pure-JAX reference (mirrors the PyTorch forward) for a sanity check
# ---------------------------------------------------------------------------
def _reference_loss(x, w, y):
    C = w.shape[1]
    wn = w / jnp.maximum(jnp.linalg.norm(w, axis=0, keepdims=True), EPS_NORM)
    xn = x / jnp.maximum(jnp.linalg.norm(x, axis=1, keepdims=True), EPS_NORM)
    cos_theta = jnp.dot(xn, wn, precision=jax.lax.Precision.HIGHEST)
    one_hot = jax.nn.one_hot(y, C, dtype=jnp.float32)
    theta = jnp.arccos(jnp.clip(cos_theta, -1.0 + EPS_CLAMP, 1.0 - EPS_CLAMP))
    m_theta = jnp.where(one_hot > 0, theta * M, theta)
    k = jnp.floor(m_theta / math.pi)
    sign = -2.0 * jnp.remainder(k, 2.0) + 1.0
    phi = sign * jnp.cos(m_theta) - 2.0 * k
    d_theta = phi - cos_theta
    logits = S * (cos_theta + d_theta)
    logp = jax.nn.log_softmax(logits, axis=1)
    ce = -jnp.mean(jnp.sum(logp * one_hot, axis=1))
    gram = jnp.arccos(jnp.clip(
        jnp.dot(wn.T, wn, precision=jax.lax.Precision.HIGHEST),
        -1.0 + EPS_CLAMP, 1.0 - EPS_CLAMP))
    present = (jnp.sum(one_hot, axis=0) > 0).astype(jnp.float32)
    n_u = jnp.sum(present)
    mask = jnp.triu(jnp.ones((C, C), jnp.float32), k=1) * present[:, None] * present[None, :]
    mhe = jnp.sum(mask / (gram * gram)) / (n_u * (n_u - 1.0) * 0.5)
    return ce + LAMBDA_MHE * mhe


if __name__ == "__main__":
    key = jax.random.PRNGKey(0)
    kx, kw, ky = jax.random.split(key, 3)

    x = jax.random.normal(kx, (BATCH, FEAT_DIM), dtype=jnp.float32)
    # xavier_normal_ for w of shape (feat_dim, num_class): std = sqrt(2/(fan_in+fan_out))
    std = math.sqrt(2.0 / (FEAT_DIM + NUM_CLASS))
    w = std * jax.random.normal(kw, (FEAT_DIM, NUM_CLASS), dtype=jnp.float32)
    y = jax.random.randint(ky, (BATCH,), 0, NUM_CLASS, dtype=jnp.int32)

    loss = jax.block_until_ready(sphereface_plus_loss(x, w, y))
    ref = jax.block_until_ready(_reference_loss(x, w, y))
    if not bool(jnp.allclose(loss, ref, rtol=2e-2, atol=2e-2)):
        raise AssertionError(f"kernel loss {loss} != reference {ref}")

    print("KERNEL_OK")
</pallas_src>

<mosaic_0001>
module attributes {stable_mosaic.version = 11 : i64} {
  func.func @_sphereface_plus_kernel(%arg0: memref<8x32xf32, #tpu.memory_space<vmem>>, %arg1: memref<32x16xf32, #tpu.memory_space<vmem>>, %arg2: memref<8x1xi32, #tpu.memory_space<vmem>>, %arg3: memref<1x8xi32, #tpu.memory_space<vmem>>, %arg4: memref<1x1xf32, #tpu.memory_space<vmem>>) attributes {dimension_semantics = [], scalar_prefetch = 0 : i64, scratch_operands = 0 : i64, tpu.core_type = #tpu.core_type<tc>} {
    %c0 = arith.constant 0 : index
    %c0_0 = arith.constant 0 : index
    %0 = vector.load %arg0[%c0, %c0_0] : memref<8x32xf32, #tpu.memory_space<vmem>>, vector<8x32xf32>
    %c0_1 = arith.constant 0 : index
    %c0_2 = arith.constant 0 : index
    %1 = vector.load %arg1[%c0_1, %c0_2] : memref<32x16xf32, #tpu.memory_space<vmem>>, vector<32x16xf32>
    %c0_3 = arith.constant 0 : index
    %c0_4 = arith.constant 0 : index
    %2 = vector.load %arg2[%c0_3, %c0_4] : memref<8x1xi32, #tpu.memory_space<vmem>>, vector<8x1xi32>
    %c0_5 = arith.constant 0 : index
    %c0_6 = arith.constant 0 : index
    %3 = vector.load %arg3[%c0_5, %c0_6] : memref<1x8xi32, #tpu.memory_space<vmem>>, vector<1x8xi32>
    %4 = arith.mulf %1, %1 : vector<32x16xf32>
    %cst = arith.constant dense<0.000000e+00> : vector<16xf32>
    %5 = vector.multi_reduction <add>, %4, %cst [0] : vector<32x16xf32> to vector<16xf32>
    %6 = vector.shape_cast %5 : vector<16xf32> to vector<1x16xf32>
    %cst_7 = arith.constant 1.000000e-24 : f32
    %7 = vector.broadcast %cst_7 : f32 to vector<1x16xf32>
    %8 = arith.maximumf %6, %7 : vector<1x16xf32>
    %9 = math.rsqrt %8 : vector<1x16xf32>
    %10 = vector.broadcast %9 : vector<1x16xf32> to vector<32x16xf32>
    %11 = arith.mulf %1, %10 : vector<32x16xf32>
    %12 = arith.mulf %0, %0 : vector<8x32xf32>
    %cst_8 = arith.constant dense<0.000000e+00> : vector<8xf32>
    %13 = vector.multi_reduction <add>, %12, %cst_8 [1] : vector<8x32xf32> to vector<8xf32>
    %14 = vector.shape_cast %13 : vector<8xf32> to vector<8x1xf32>
    %cst_9 = arith.constant 1.000000e-24 : f32
    %15 = vector.broadcast %cst_9 : f32 to vector<8x1xf32>
    %16 = arith.maximumf %14, %15 : vector<8x1xf32>
    %17 = math.rsqrt %16 : vector<8x1xf32>
    %18 = vector.broadcast %17 : vector<8x1xf32> to vector<8x32xf32>
    %19 = arith.mulf %0, %18 : vector<8x32xf32>
    %cst_10 = arith.constant dense<0.000000e+00> : vector<8x16xf32>
    %20 = tpu.matmul %19, %11, %cst_10 {dimension_numbers = #tpu.dot_dimension_numbers<[1], [0], [0], [1], [0, 0, 1, 1], [], []>} : vector<8x32xf32>, vector<32x16xf32>, vector<8x16xf32> -> vector<8x16xf32>
    %cst_11 = arith.constant dense<0.000000e+00> : vector<16x16xf32>
    %21 = tpu.matmul %11, %11, %cst_11 {dimension_numbers = #tpu.dot_dimension_numbers<[0], [0], [1], [1], [0, 1, 1, 1], [], []>} : vector<32x16xf32>, vector<32x16xf32>, vector<16x16xf32> -> vector<16x16xf32>
    %22 = tpu.iota {dimensions = array<i32: 1>} : vector<8x16xi32>
    %23 = vector.broadcast %2 : vector<8x1xi32> to vector<8x16xi32>
    %24 = arith.cmpi eq, %22, %23 : vector<8x16xi32>
    %25 = arith.extui %24 : vector<8x16xi1> to vector<8x16xi32>
    %26 = arith.sitofp %25 : vector<8x16xi32> to vector<8x16xf32>
    %cst_12 = arith.constant dense<0.000000e+00> : vector<16xf32>
    %27 = vector.multi_reduction <add>, %26, %cst_12 [0] : vector<8x16xf32> to vector<16xf32>
    %28 = vector.shape_cast %27 : vector<16xf32> to vector<1x16xf32>
    %cst_13 = arith.constant 0.000000e+00 : f32
    %29 = vector.broadcast %cst_13 : f32 to vector<1x16xf32>
    %30 = arith.cmpf ogt, %28, %29 : vector<1x16xf32>
    %31 = arith.extui %30 : vector<1x16xi1> to vector<1x16xi32>
    %32 = arith.sitofp %31 : vector<1x16xi32> to vector<1x16xf32>
    %33 = tpu.iota {dimensions = array<i32: 0>} : vector<16x8xi32>
    %34 = vector.broadcast %3 : vector<1x8xi32> to vector<16x8xi32>
    %35 = arith.cmpi eq, %33, %34 : vector<16x8xi32>
    %36 = arith.extui %35 : vector<16x8xi1> to vector<16x8xi32>
    %37 = arith.sitofp %36 : vector<16x8xi32> to vector<16x8xf32>
    %cst_14 = arith.constant dense<0.000000e+00> : vector<16xf32>
    %38 = vector.multi_reduction <add>, %37, %cst_14 [1] : vector<16x8xf32> to vector<16xf32>
    %39 = vector.shape_cast %38 : vector<16xf32> to vector<16x1xf32>
    %cst_15 = arith.constant 0.000000e+00 : f32
    %40 = vector.broadcast %cst_15 : f32 to vector<16x1xf32>
    %41 = arith.cmpf ogt, %39, %40 : vector<16x1xf32>
    %42 = arith.extui %41 : vector<16x1xi1> to vector<16x1xi32>
    %43 = arith.sitofp %42 : vector<16x1xi32> to vector<16x1xf32>
    %cst_16 = arith.constant dense<0.000000e+00> : vector<1xf32>
    %44 = vector.multi_reduction <add>, %32, %cst_16 [1] : vector<1x16xf32> to vector<1xf32>
    %45 = vector.shape_cast %44 : vector<1xf32> to vector<1x1xf32>
    %cst_17 = arith.constant -0.999989986 : f32
    %cst_18 = arith.constant 0.999989986 : f32
    %46 = vector.broadcast %cst_17 : f32 to vector<8x16xf32>
    %47 = arith.maximumf %46, %20 : vector<8x16xf32>
    %48 = vector.broadcast %cst_18 : f32 to vector<8x16xf32>
    %49 = arith.minimumf %48, %47 : vector<8x16xf32>
    %cst_19 = arith.constant 2.000000e+00 : f32
    %50 = vector.broadcast %cst_19 : f32 to vector<8x16xf32>
    %51 = arith.mulf %50, %49 : vector<8x16xf32>
    %cst_20 = arith.constant 1.000000e+00 : f32
    %52 = vector.broadcast %cst_20 : f32 to vector<8x16xf32>
    %53 = arith.subf %51, %52 : vector<8x16xf32>
    %cst_21 = arith.constant 1.000000e+00 : f32
    %54 = vector.broadcast %cst_21 : f32 to vector<8x16xf32>
    %55 = arith.addf %54, %49 : vector<8x16xf32>
    %cst_22 = arith.constant 5.000000e-01 : f32
    %56 = vector.broadcast %cst_22 : f32 to vector<8x16xf32>
    %57 = arith.mulf %55, %56 : vector<8x16xf32>
    %58 = math.sqrt %57 : vector<8x16xf32>
    %59 = arith.mulf %53, %58 : vector<8x16xf32>
    %cst_23 = arith.constant -5.000000e-01 : f32
    %60 = vector.broadcast %cst_23 : f32 to vector<8x16xf32>
    %61 = arith.cmpf ole, %49, %60 : vector<8x16xf32>
    %62 = arith.extui %61 : vector<8x16xi1> to vector<8x16xi32>
    %63 = arith.sitofp %62 : vector<8x16xi32> to vector<8x16xf32>
    %cst_24 = arith.constant 2.000000e+00 : f32
    %64 = vector.broadcast %cst_24 : f32 to vector<8x16xf32>
    %65 = arith.mulf %64, %63 : vector<8x16xf32>
    %cst_25 = arith.constant 1.000000e+00 : f32
    %66 = vector.broadcast %cst_25 : f32 to vector<8x16xf32>
    %67 = arith.subf %66, %65 : vector<8x16xf32>
    %68 = arith.mulf %67, %59 : vector<8x16xf32>
    %cst_26 = arith.constant 2.000000e+00 : f32
    %69 = vector.broadcast %cst_26 : f32 to vector<8x16xf32>
    %70 = arith.mulf %69, %63 : vector<8x16xf32>
    %71 = arith.subf %68, %70 : vector<8x16xf32>
    %72 = arith.select %24, %71, %49 : vector<8x16xi1>, vector<8x16xf32>
    %cst_27 = arith.constant 3.000000e+01 : f32
    %73 = vector.broadcast %cst_27 : f32 to vector<8x16xf32>
    %74 = arith.mulf %73, %72 : vector<8x16xf32>
    %cst_28 = arith.constant dense<0xFF800000> : vector<8xf32>
    %75 = vector.multi_reduction <maximumf>, %74, %cst_28 [1] : vector<8x16xf32> to vector<8xf32>
    %76 = vector.shape_cast %75 : vector<8xf32> to vector<8x1xf32>
    %77 = vector.broadcast %76 : vector<8x1xf32> to vector<8x16xf32>
    %78 = arith.subf %74, %77 : vector<8x16xf32>
    %79 = math.exp %78 : vector<8x16xf32>
    %cst_29 = arith.constant dense<0.000000e+00> : vector<8xf32>
    %80 = vector.multi_reduction <add>, %79, %cst_29 [1] : vector<8x16xf32> to vector<8xf32>
    %81 = vector.shape_cast %80 : vector<8xf32> to vector<8x1xf32>
    %82 = math.log %81 : vector<8x1xf32>
    %83 = arith.addf %82, %76 : vector<8x1xf32>
    %84 = arith.mulf %74, %26 : vector<8x16xf32>
    %cst_30 = arith.constant dense<0.000000e+00> : vector<8xf32>
    %85 = vector.multi_reduction <add>, %84, %cst_30 [1] : vector<8x16xf32> to vector<8xf32>
    %86 = vector.shape_cast %85 : vector<8xf32> to vector<8x1xf32>
    %87 = arith.subf %83, %86 : vector<8x1xf32>
    %cst_31 = arith.constant dense<0.000000e+00> : vector<1xf32>
    %88 = vector.multi_reduction <add>, %87, %cst_31 [0] : vector<8x1xf32> to vector<1xf32>
    %89 = vector.shape_cast %88 : vector<1xf32> to vector<1x1xf32>
    %cst_32 = arith.constant 1.250000e-01 : f32
    %90 = vector.broadcast %cst_32 : f32 to vector<1x1xf32>
    %91 = arith.mulf %89, %90 : vector<1x1xf32>
    %cst_33 = arith.constant -0.999989986 : f32
    %cst_34 = arith.constant 0.999989986 : f32
    %92 = vector.broadcast %cst_33 : f32 to vector<16x16xf32>
    %93 = arith.maximumf %92, %21 : vector<16x16xf32>
    %94 = vector.broadcast %cst_34 : f32 to vector<16x16xf32>
    %95 = arith.minimumf %94, %93 : vector<16x16xf32>
    %96 = math.absf %95 : vector<16x16xf32>
    %cst_35 = arith.constant -0.0012624911 : f32
    %97 = vector.broadcast %cst_35 : f32 to vector<16x16xf32>
    %98 = arith.mulf %97, %96 : vector<16x16xf32>
    %cst_36 = arith.constant 6.670090e-03 : f32
    %99 = vector.broadcast %cst_36 : f32 to vector<16x16xf32>
    %100 = arith.addf %98, %99 : vector<16x16xf32>
    %101 = arith.mulf %100, %96 : vector<16x16xf32>
    %cst_37 = arith.constant -0.0170881264 : f32
    %102 = vector.broadcast %cst_37 : f32 to vector<16x16xf32>
    %103 = arith.addf %101, %102 : vector<16x16xf32>
    %104 = arith.mulf %103, %96 : vector<16x16xf32>
    %cst_38 = arith.constant 0.0308918804 : f32
    %105 = vector.broadcast %cst_38 : f32 to vector<16x16xf32>
    %106 = arith.addf %104, %105 : vector<16x16xf32>
    %107 = arith.mulf %106, %96 : vector<16x16xf32>
    %cst_39 = arith.constant -0.0501743034 : f32
    %108 = vector.broadcast %cst_39 : f32 to vector<16x16xf32>
    %109 = arith.addf %107, %108 : vector<16x16xf32>
    %110 = arith.mulf %109, %96 : vector<16x16xf32>
    %cst_40 = arith.constant 0.0889789909 : f32
    %111 = vector.broadcast %cst_40 : f32 to vector<16x16xf32>
    %112 = arith.addf %110, %111 : vector<16x16xf32>
    %113 = arith.mulf %112, %96 : vector<16x16xf32>
    %cst_41 = arith.constant -0.214598805 : f32
    %114 = vector.broadcast %cst_41 : f32 to vector<16x16xf32>
    %115 = arith.addf %113, %114 : vector<16x16xf32>
    %116 = arith.mulf %115, %96 : vector<16x16xf32>
    %cst_42 = arith.constant 1.57079625 : f32
    %117 = vector.broadcast %cst_42 : f32 to vector<16x16xf32>
    %118 = arith.addf %116, %117 : vector<16x16xf32>
    %cst_43 = arith.constant 1.000000e+00 : f32
    %119 = vector.broadcast %cst_43 : f32 to vector<16x16xf32>
    %120 = arith.subf %119, %96 : vector<16x16xf32>
    %121 = math.sqrt %120 : vector<16x16xf32>
    %122 = arith.mulf %121, %118 : vector<16x16xf32>
    %cst_44 = arith.constant 0.000000e+00 : f32
    %123 = vector.broadcast %cst_44 : f32 to vector<16x16xf32>
    %124 = arith.cmpf olt, %95, %123 : vector<16x16xf32>
    %cst_45 = arith.constant 3.14159274 : f32
    %125 = vector.broadcast %cst_45 : f32 to vector<16x16xf32>
    %126 = arith.subf %125, %122 : vector<16x16xf32>
    %127 = arith.select %124, %126, %122 : vector<16x16xi1>, vector<16x16xf32>
    %128 = tpu.iota {dimensions = array<i32: 0>} : vector<16x16xi32>
    %129 = tpu.iota {dimensions = array<i32: 1>} : vector<16x16xi32>
    %130 = arith.cmpi sgt, %129, %128 : vector<16x16xi32>
    %131 = arith.extui %130 : vector<16x16xi1> to vector<16x16xi32>
    %132 = arith.sitofp %131 : vector<16x16xi32> to vector<16x16xf32>
    %133 = vector.broadcast %43 : vector<16x1xf32> to vector<16x16xf32>
    %134 = arith.mulf %132, %133 : vector<16x16xf32>
    %135 = vector.broadcast %32 : vector<1x16xf32> to vector<16x16xf32>
    %136 = arith.mulf %134, %135 : vector<16x16xf32>
    %137 = arith.mulf %127, %127 : vector<16x16xf32>
    %138 = tpu.reciprocal %137 {approx = true} : vector<16x16xf32> -> vector<16x16xf32>
    %139 = arith.mulf %136, %138 : vector<16x16xf32>
    %cst_46 = arith.constant dense<0.000000e+00> : vector<16xf32>
    %140 = vector.multi_reduction <add>, %139, %cst_46 [1] : vector<16x16xf32> to vector<16xf32>
    %141 = vector.shape_cast %140 : vector<16xf32> to vector<16x1xf32>
    %cst_47 = arith.constant dense<0.000000e+00> : vector<1xf32>
    %142 = vector.multi_reduction <add>, %141, %cst_47 [0] : vector<16x1xf32> to vector<1xf32>
    %143 = vector.shape_cast %142 : vector<1xf32> to vector<1x1xf32>
    %cst_48 = arith.constant 1.000000e+00 : f32
    %144 = vector.broadcast %cst_48 : f32 to vector<1x1xf32>
    %145 = arith.subf %45, %144 : vector<1x1xf32>
    %146 = arith.mulf %45, %145 : vector<1x1xf32>
    %cst_49 = arith.constant 5.000000e-01 : f32
    %147 = vector.broadcast %cst_49 : f32 to vector<1x1xf32>
    %148 = arith.mulf %146, %147 : vector<1x1xf32>
    %cst_50 = arith.constant 1.000000e+00 : f32
    %149 = vector.broadcast %cst_50 : f32 to vector<1x1xf32>
    %150 = arith.maximumf %148, %149 : vector<1x1xf32>
    %151 = tpu.reciprocal %150 {approx = true} : vector<1x1xf32> -> vector<1x1xf32>
    %152 = arith.mulf %143, %151 : vector<1x1xf32>
    %cst_51 = arith.constant 1.000000e+00 : f32
    %153 = vector.broadcast %cst_51 : f32 to vector<1x1xf32>
    %154 = arith.mulf %153, %152 : vector<1x1xf32>
    %155 = arith.addf %91, %154 : vector<1x1xf32>
    %c0_52 = arith.constant 0 : index
    %c0_53 = arith.constant 0 : index
    %156 = vector.load %arg4[%c0_52, %c0_53] : memref<1x1xf32, #tpu.memory_space<vmem>>, vector<1x1xf32>
    tpu.vector_store %arg4[%c0_52, %c0_53], %155 {strides = array<i32>} : memref<1x1xf32, #tpu.memory_space<vmem>>, vector<1x1xf32>,
    return
  }
}

</mosaic_0001>

<bundles_post_ra>
// kernel: sphereface_plus_loss.1
= control target key start
LH: loop header
LB: loop body
LE: loop exit
PB: predicated region body
PF: predicated region fallthrough
CT: control target
= control target key end

     0   :  { %vm50_vm0 = vcmask 261120   ;;  %vm29_vm1 = vcmask 130048   ;;  %s684_s0 = inlined_call_operand.vmem [shape: f32[8,32], index: 0, kind: input, shape index: {}]   ;;  %s685_s1 = inlined_call_operand.vmem [shape: f32[32,16], index: 1, kind: input, shape index: {}]   ;;  %s686_s2 = inlined_call_operand.vmem [shape: s32[8,1], index: 2, kind: input, shape index: {}]   ;;  %s687_s3 = inlined_call_operand.vmem [shape: s32[1,8], index: 3, kind: input, shape index: {}]   ;;  %s688_s4 = inlined_call_operand.hbm [shape: f32[1,1], index: 4, kind: output, shape index: {}]  }
   0x1   :  { %v18_v0 = vld [vmem:[%s684_s0] sm:$0xff]  ;;  %v20_v2 = vld [vmem:[%s685_s1 + $0x8] sm:$0xff]  ;;  %v21_v4 = vld [vmem:[%s685_s1 + $0x10] sm:$0xff] }
   0x2   :  { %v19_v1 = vld [vmem:[%s685_s1] sm:$0xff]  ;;  %v49_v3 = vmul.f32 %v18_v0, %v18_v0  ;;  %v22_v5 = vld [vmem:[%s685_s1 + $0x18] sm:$0xff]  ;;  %v26_v7 = vmul.f32 %v20_v2, %v20_v2 }
   0x3   :  { %v25_v6 = vmul.f32 %v19_v1, %v19_v1 }
   0x4   :  { %9 = vsyncpa [#allocation3], 0  ;;  %v27_v8 = vmul.f32 %v21_v4, %v21_v4  ;;  %v28_v9 = vmul.f32 %v22_v5, %v22_v5  ;;  %v51_v10 = vsel %vm50_vm0, %v49_v3, 0.0  ;;  %v31_v12 = vsel %vm29_vm1, %v26_v7, 0.0  ;;  %v23_v27 = vld [vmem:[%s686_s2] sm:$0xff] }
   0x5   :  { %v30_v11 = vsel %vm29_vm1, %v25_v6, 0.0  ;;  %52 = vadd.xlane.f32.xlu0 %v51_v10  ;;  %v563_v24 = vmov 0.0|0.0   ;;  %vm564_vm2 = vmmov 0   ;;  %v565_v25 = vmov 0.0  }
   0x6   :  { %v32_v13 = vadd.f32 %v31_v12, %v30_v11  ;;  %v33_v14 = vsel %vm29_vm1, %v27_v8, 0.0  ;;  %v35_v15 = vsel %vm29_vm1, %v28_v9, 0.0  ;;  %498 = vmatprep.subr.bf16.mxu0 %v563_v24  ;;  %484 = vmatprep.mubr.msk.f32.mxu0 %vm564_vm2, %v565_v25  ;;  %v566_v29 = vmov 0  }
   0x7   :  { %517 = vset.pattern.permute.xlu1 %v566_v29  ;;  %v243_v53 = vlaneseq  ;;  %vm274_vm8 = vcmask 64512  }
   0x8   :  { %v34_v16 = vadd.f32 %v33_v14, %v32_v13  ;;  %246 = vperm.xlu1 %517, %v23_v27  }
   0x9   :  { %v625_v61 = vand.u32 127, %v243_v53  ;;  %v627_v62 = vshrl.u32 %v243_v53, 7 }
   0xa   :  { %v36_v17 = vadd.f32 %v35_v15, %v34_v16 }
   0xb   :  { %v635_v3 = vadd.s32 8, %v627_v62 }
   0xc   :  { %v37_v18 = vrot.slane %v36_v17, 4 }
   0xe   :  { %v38_v19 = vadd.f32 %v37_v18, %v36_v17 }
  0x10   :  { %v39_v20 = vrot.slane %v38_v19, 2 }
  0x12   :  { %v40_v21 = vadd.f32 %v39_v20, %v38_v19 }
  0x14   :  { %v41_v22 = vrot.slane %v40_v21, 1 }
  0x16   :  { %v42_v23 = vadd.f32 %v41_v22, %v40_v21 }
  0x18   :  { %v43_v26 = vmax.f32 %v42_v23, 1e-24 }
  0x1a   :  { %519 = vrsqrt.f32 %v43_v26 }
  0x24   :  { %v520_v28 = vpop.eup %519 }
  0x25   :  { %v45_v30 = vmul.f32 %v520_v28, %v19_v1  ;;  %v46_v31 = vmul.f32 %v520_v28, %v20_v2  ;;  %v48_v32 = vmul.f32 %v520_v28, %v22_v5  ;;  %v47_v34 = vmul.f32 %v520_v28, %v21_v4  ;;  %v452_v1 = vld [vmem:[%s687_s3] ss:$0 sm:$0xff]  ;;  %s567_s3 = smov [#allocation2]  }
  0x26   :  { %vm268_vm7 = vcmp.eq.s32.totalorder %v627_v62, %v452_v1  ;;  %vm269_vm9 = vcmp.eq.s32.totalorder %v635_v3, %v452_v1  ;;  %s439_s26 = sshll.u32 %s567_s3, 4  ;;  %s440_s26 = int_to_ptr.vmem [resolvable:$true] %s439_s26 }
  0x27   :  { %v499_v33 = vpack.c.bf16 %v46_v31, %v45_v30  ;;  %v502_v35 = vpack.c.bf16 %v48_v32, %v47_v34  ;;  %v453_v6 = vsel %vm268_vm7, 1.0, %v565_v25  ;;  %v454_v9 = vsel %vm269_vm9, 1.0, %v565_v25  ;;  %s539_s27 = scalar_lea.vmem %s440_s26, 16  ;;  %s543_s28 = scalar_lea.vmem %s440_s26, 32 }
  0x28   :  { %v275_v8 = vsel %vm274_vm8, %v453_v6, 0.0  ;;  %v278_v10 = vsel %vm274_vm8, %v454_v9, 0.0  ;;  %p540_p0 = scmp.ne.s32.totalorder %s440_s26, %s539_s27  ;;  %p544_p1 = scmp.lt.s32.totalorder %s440_s26, %s440_s26 }
  0x29   :  { %500 = vmatpush3.bf16.msra.mxu0 %v499_v33  ;;  %505 = vmatprep.subr.bf16.mxu1 %v499_v33  ;;  %p545_p2 = scmp.lt.s32.totalorder %s543_s28, %s539_s27 }
  0x2a   :  { %501 = vmatprep.subr.bf16.mxu0 %v563_v24  ;;  %507 = vmatpush3.bf16.msra.mxu1 %v499_v33 }
  0x2b   :  { %509 = vmatprep.subr.bf16.mxu1 %v502_v35  ;;  %p546_p3 = por %p545_p2, %p544_p1 }
  0x2d   :  { %503 = vmatpush3.bf16.msra.mxu0 %v502_v35  ;;  %p547_p4 = pnand %p546_p3, %p540_p0 }
  0x2e   :  { %511 = vmatpush3.bf16.msra.mxu1 %v502_v35 }
  0x32   :  { %130 = vxpose.xlu0.b32.start [1/4] (short) (narrow) %v45_v30, 16 }
  0x36   :  { %131 = vxpose.xlu0.b32.cont [2/4] (short) (narrow) %v46_v31, 16 }
  0x3a   :  { %132 = vxpose.xlu0.b32.cont [3/4] (short) (narrow) %v47_v34, 16 }
  0x3e   :  { %133 = vxpose.xlu0.b32.end [4/4] (short) (narrow) %v48_v32, 16 }
  0x67   :  { %518 = vset.pattern.permute.xlu0 %v566_v29 }
  0x87   :  { %v247_v63 = vpop.permute.xlu1 %246 }
  0x88   :  { %vm248_vm6 = vcmp.eq.s32.totalorder %v625_v61, %v247_v63 }
  0x92   :  { %v53_v36 = vpop.xlane.xlu0 %52 }
  0x93   :  { %v54_v37 = vmax.f32 %v53_v36, 1e-24 }
  0x95   :  { %521 = vrsqrt.f32 %v54_v37 }
  0x9f   :  { %v522_v38 = vpop.eup %521 }
  0xa0   :  { %v56_v39 = vmul.f32 %v522_v38, %v18_v0 }
  0xa2   :  { %485 = vmatmul.mubr.msk.f32.vlgmr.msra.gmra.mrb[0].mxu0 %vm50_vm0, %v56_v39 }
  0xb2   :  { %v146_v40 = vpop.trf.xlu0 }
  0xb3   :  { %495 = vmatprep.mubr.msk.f32.mxu1 %vm50_vm0, %v146_v40 }
  0xb6   :  { %v147_v41 = vpop.trf.xlu0 }
  0xb7   :  { %496 = vmatmul.mubr.msk.f32.vlgmr.msra.gmra.mrb[0].mxu1 %vm50_vm0, %v147_v41  ;;  %v651_v41 = vsel %vm248_vm6, 1.0, %v565_v25  ;;  %vm396_vm0 = vcmp.gt.s32.totalorder %v625_v61, %v635_v3 }
 0x175   :  { %v126_v42 = vpop.f32.mrb[0].mxu0 }
 0x176   :  { %v457_v43 = vclamps-f32 %v126_v42, 0.99999  ;;  %v486_v44 = vpop.f32.mrb[1].mxu0 }
 0x177   :  { %v251_v44 = vsel %vm29_vm1, %v651_v41, 0.0 }
 0x178   :  { %v294_v45 = vadd.f32 1.0, %v457_v43  ;;  %vm304_vm3 = vcmp.le.f32.partialorder %v457_v43, -0.5  ;;  %v292_v48 = vmul.f32 2.0, %v457_v43 }
 0x179   :  { %v459_v47 = vsel %vm304_vm3, 1.0, %v565_v25 }
 0x17a   :  { %v295_v46 = vmul.f32 0.5, %v294_v45  ;;  %v307_v51 = vmul.f32 2.0, %v459_v47  ;;  %v458_v54 = vadd.f32 -1.0, %v292_v48 }
 0x17c   :  { %523 = vrsqrt.f32 %v295_v46  ;;  %vm298_vm4 = vcmp.eq.f32.partialorder %v295_v46, inf  ;;  %v301_v52 = vand.u32 2147483648, %v295_v46  ;;  %vm300_vm5 = vcmp.eq.f32.partialorder %v295_v46, 0.0 }
 0x17d   :  { %v308_v59 = vsub.f32 1.0, %v307_v51 }
 0x186   :  { %v524_v49 = vpop.eup %523 }
 0x187   :  { %v297_v50 = vmul.f32 %v524_v49, %v295_v46  ;;  %v252_v49 = vrot.slane %v251_v44, 4 }
 0x189   :  { %v299_v55 = vsel %vm298_vm4, %v295_v46, %v297_v50  ;;  %vm395_vm4 = vcmp.gt.s32.totalorder %v625_v61, %v627_v62 }
 0x18a   :  { %v302_v56 = vsel %vm300_vm5, %v301_v52, %v299_v55  ;;  %v621_v57 = vpop.f32.mrb[0].mxu1 }
 0x18b   :  { %v303_v58 = vmul.f32 %v458_v54, %v302_v56  ;;  %v623_v60 = vpop.f32.mrb[1].mxu1  ;;  %v461_v11 = vclamps-f32 %v621_v57, 0.99999  ;;  %v253_v54 = vadd.f32 %v252_v49, %v251_v44 }
 0x18c   :  { %v460_v14 = vclamps-f32 %v623_v60, 0.99999 }
 0x18d   :  { %v309_v0 = vmul.f32 %v308_v59, %v303_v58  ;;  %v342_v12 = vand.u32 2147483647, %v461_v11  ;;  %v254_v59 = vrot.slane %v253_v54, 2  ;;  %vm390_vm14 = vcmp.lt.f32.partialorder %v461_v11, 0.0 }
 0x18e   :  { %v341_v16 = vand.u32 2147483647, %v460_v14  ;;  %vm389_vm15 = vcmp.lt.f32.partialorder %v460_v14, 0.0 }
 0x18f   :  { %v310_v2 = vsub.f32 %v309_v0, %v307_v51  ;;  %v344_v13 = vmul.f32 -0.0012624911, %v342_v12  ;;  %v372_v29 = vsub.f32 1.0, %v342_v12  ;;  %v255_v1 = vadd.f32 %v254_v59, %v253_v54 }
 0x190   :  { %v343_v18 = vmul.f32 -0.0012624911, %v341_v16  ;;  %v371_v35 = vsub.f32 1.0, %v341_v16 }
 0x191   :  { %v311_v4 = vsel %vm248_vm6, %v310_v2, %v457_v43  ;;  %v346_v15 = vadd.f32 0.00667009, %v344_v13  ;;  %525 = vrsqrt.f32 %v372_v29  ;;  %vm382_vm10 = vcmp.eq.f32.partialorder %v372_v29, inf }
 0x192   :  { %v639_v5 = vmul.f32 30.0, %v311_v4  ;;  %v345_v20 = vadd.f32 0.00667009, %v343_v18  ;;  %527 = vrsqrt.f32 %v371_v35  ;;  %v385_v45 = vand.u32 2147483648, %v372_v29 }
 0x193   :  { %v348_v17 = vmul.f32 %v346_v15, %v342_v12  ;;  %vm384_vm11 = vcmp.eq.f32.partialorder %v372_v29, 0.0  ;;  %vm375_vm12 = vcmp.eq.f32.partialorder %v371_v35, inf  ;;  %v378_v57 = vand.u32 2147483648, %v371_v35 }
 0x194   :  { %v313_v7 = vsel %vm29_vm1, %v639_v5, -inf  ;;  %v347_v22 = vmul.f32 %v345_v20, %v341_v16  ;;  %vm377_vm13 = vcmp.eq.f32.partialorder %v371_v35, 0.0 }
 0x195   :  { %314 = vmax.xlane.f32.xlu1 %v313_v7  ;;  %v350_v19 = vadd.f32 -0.017088126, %v348_v17 }
 0x196   :  { %v349_v24 = vadd.f32 -0.017088126, %v347_v22 }
 0x197   :  { %v352_v21 = vmul.f32 %v350_v19, %v342_v12 }
 0x198   :  { %v351_v27 = vmul.f32 %v349_v24, %v341_v16 }
 0x199   :  { %276 = vadd.xlane.f32.xlu1 %v275_v8  ;;  %v354_v23 = vadd.f32 0.03089188, %v352_v21  ;;  %v256_v8 = vrot.slane %v255_v1, 1  ;;  %v462_v21 = vsel %vm395_vm4, 1.0, %v565_v25 }
 0x19a   :  { %v353_v30 = vadd.f32 0.03089188, %v351_v27 }
 0x19b   :  { %v356_v26 = vmul.f32 %v354_v23, %v342_v12  ;;  %v526_v38 = vpop.eup %525  ;;  %v257_v15 = vadd.f32 %v256_v8, %v255_v1 }
 0x19c   :  { %v355_v32 = vmul.f32 %v353_v30, %v341_v16  ;;  %v381_v42 = vmul.f32 %v526_v38, %v372_v29  ;;  %v528_v48 = vpop.eup %527 }
 0x19d   :  { %279 = vadd.xlane.f32.xlu1 %v278_v10  ;;  %v358_v28 = vadd.f32 -0.050174303, %v356_v26  ;;  %v374_v53 = vmul.f32 %v528_v48, %v371_v35  ;;  %vm258_vm3 = vcmp.gt.f32.partialorder %v257_v15, 0.0 }
 0x19e   :  { %v357_v34 = vadd.f32 -0.050174303, %v355_v32  ;;  %v383_v47 = vsel %vm382_vm10, %v372_v29, %v381_v42  ;;  %v451_v20 = vsel %vm258_vm3, 1.0, %v565_v25  ;;  %v325_v29 = vmul.f32 %v651_v41, %v639_v5 }
 0x19f   :  { %v360_v31 = vmul.f32 %v358_v28, %v342_v12  ;;  %v386_v51 = vsel %vm384_vm11, %v385_v45, %v383_v47  ;;  %v376_v58 = vsel %vm375_vm12, %v371_v35, %v374_v53  ;;  %v287_v62 = vsel %vm29_vm1, %v451_v20, 0.0 }
 0x1a0   :  { %v359_v37 = vmul.f32 %v357_v34, %v341_v16  ;;  %v379_v0 = vsel %vm377_vm13, %v378_v57, %v376_v58 }
 0x1a1   :  { %v362_v33 = vadd.f32 0.08897899, %v360_v31 }
 0x1a2   :  { %v361_v40 = vadd.f32 0.08897899, %v359_v37 }
 0x1a3   :  { %v364_v36 = vmul.f32 %v362_v33, %v342_v12 }
 0x1a4   :  { %v363_v46 = vmul.f32 %v361_v40, %v341_v16 }
 0x1a5   :  { %v366_v39 = vadd.f32 -0.2145988, %v364_v36 }
 0x1a6   :  { %v365_v52 = vadd.f32 -0.2145988, %v363_v46 }
 0x1a7   :  { %v368_v43 = vmul.f32 %v366_v39, %v342_v12 }
 0x1a8   :  { %v367_v56 = vmul.f32 %v365_v52, %v341_v16  ;;  %v463_v16 = vsel %vm396_vm0, 1.0, %v565_v25 }
 0x1a9   :  { %v370_v50 = vadd.f32 1.5707963, %v368_v43 }
 0x1aa   :  { %v369_v63 = vadd.f32 1.5707963, %v367_v56 }
 0x1ab   :  { %v388_v55 = vmul.f32 %v386_v51, %v370_v50 }
 0x1ac   :  { %v387_v4 = vmul.f32 %v379_v0, %v369_v63 }
 0x1ad   :  { %v392_v60 = vsub.f32 3.1415927, %v388_v55 }
 0x1ae   :  { %v391_v10 = vsub.f32 3.1415927, %v387_v4 }
 0x1af   :  { %v394_v2 = vsel %vm390_vm14, %v392_v60, %v388_v55 }
 0x1b0   :  { %v406_v6 = vmul.f32 %v394_v2, %v394_v2  ;;  %v393_v11 = vsel %vm389_vm15, %v391_v10, %v387_v4 }
 0x1b1   :  { %v405_v18 = vmul.f32 %v393_v11, %v393_v11 }
 0x1b2   :  { %529 = vrcp.f32 %v406_v6 }
 0x1bc   :  { %v530_v23 = vpop.eup %529 }
 0x222   :  { %v315_v7 = vpop.xlane.xlu1 %314 }
 0x223   :  { %v316_v9 = vsub.f32 %v639_v5, %v315_v7 }
 0x225   :  { %v317_v12 = vmul.f32 1.442695, %v316_v9 }
 0x226   :  { %v277_v13 = vpop.xlane.xlu1 %276 }
 0x227   :  { %531 = vpow2.f32 %v317_v12  ;;  %vm281_vm5 = vcmp.gt.f32.partialorder %v277_v13, 0.0 }
 0x228   :  { %533 = vrcp.f32 %v405_v18  ;;  %v455_v3 = vsel %vm281_vm5, 1.0, %v565_v25 }
 0x229   :  { %v401_v27 = vmul.f32 %v462_v21, %v455_v3 }
 0x22a   :  { %v280_v17 = vpop.xlane.xlu1 %279 }
 0x22b   :  { %vm282_vm2 = vcmp.gt.f32.partialorder %v280_v17, 0.0  ;;  %v403_v30 = vmul.f32 %v451_v20, %v401_v27 }
 0x22c   :  { %v456_v14 = vsel %vm282_vm2, 1.0, %v565_v25  ;;  %v326_v25 = vsel %vm29_vm1, %v325_v29, 0.0 }
 0x22d   :  { %v402_v19 = vmul.f32 %v463_v16, %v456_v14 }
 0x22f   :  { %v404_v22 = vmul.f32 %v451_v20, %v402_v19 }
 0x231   :  { %v532_v24 = vpop.eup %531  ;;  %v410_v26 = vmul.f32 %v530_v23, %v404_v22 }
 0x232   :  { %v319_v28 = vsel %vm29_vm1, %v532_v24, 0.0  ;;  %v534_v31 = vpop.eup %533 }
 0x233   :  { %320 = vadd.xlane.f32.xlu1 %v319_v28  ;;  %v414_v61 = vsel %vm29_vm1, %v410_v26, 0.0  ;;  %v409_v32 = vmul.f32 %v534_v31, %v403_v30 }
 0x234   :  { %415 = vadd.xlane.f32.xlu0 %v414_v61 }
 0x235   :  { %v411_v33 = vsel %vm29_vm1, %v409_v32, 0.0  ;;  %vm431_vm1 = vcmask 0  }
 0x237   :  { %288 = vadd.xlane.f32.xlu1 %v287_v62 }
 0x23b   :  { %327 = vadd.xlane.f32.xlu1 %v326_v25 }
 0x23f   :  { %412 = vadd.xlane.f32.xlu1 %v411_v33 }
 0x2c0   :  { %v321_v34 = vpop.xlane.xlu1 %320 }
 0x2c1   :  { %535 = vlog2.f32 %v321_v34  ;;  %v416_v5 = vpop.xlane.xlu0 %415 }
 0x2c4   :  { %v289_v35 = vpop.xlane.xlu1 %288 }
 0x2c5   :  { %v464_v36 = vadd.f32 -1.0, %v289_v35 }
 0x2c7   :  { %v425_v37 = vmul.f32 %v464_v36, %v289_v35 }
 0x2c8   :  { %v328_v38 = vpop.xlane.xlu1 %327 }
 0x2c9   :  { %v426_v40 = vmul.f32 0.5, %v425_v37 }
 0x2cb   :  { %v536_v39 = vpop.eup %535  ;;  %v427_v45 = vmax.f32 %v426_v40, 1.0 }
 0x2cc   :  { %v323_v42 = vmul.f32 0.6931472, %v536_v39  ;;  %v413_v41 = vpop.xlane.xlu1 %412 }
 0x2cd   :  { %v417_v43 = vadd.f32 %v416_v5, %v413_v41  ;;  %537 = vrcp.f32 %v427_v45 }
 0x2ce   :  { %v324_v44 = vadd.f32 %v323_v42, %v315_v7 }
 0x2cf   :  { %v418_v46 = vrot.slane %v417_v43, 4 }
 0x2d0   :  { %v329_v47 = vsub.f32 %v324_v44, %v328_v38 }
 0x2d1   :  { %v419_v48 = vadd.f32 %v418_v46, %v417_v43 }
 0x2d2   :  { %v330_v49 = vrot.slane %v329_v47, 4 }
 0x2d3   :  { %v420_v50 = vrot.slane %v419_v48, 2 }
 0x2d4   :  { %v331_v51 = vadd.f32 %v330_v49, %v329_v47 }
 0x2d5   :  { %v421_v52 = vadd.f32 %v420_v50, %v419_v48 }
 0x2d6   :  { %v332_v53 = vrot.slane %v331_v51, 2 }
 0x2d7   :  { %v422_v54 = vrot.slane %v421_v52, 1  ;;  %v538_v59 = vpop.eup %537 }
 0x2d8   :  { %v333_v55 = vadd.f32 %v332_v53, %v331_v51 }
 0x2d9   :  { %v423_v57 = vadd.f32 %v422_v54, %v421_v52 }
 0x2da   :  { %v334_v56 = vrot.slane %v333_v55, 1 }
 0x2db   :  { %v429_v63 = vmul.f32 %v538_v59, %v423_v57 }
 0x2dc   :  { %v335_v58 = vadd.f32 %v334_v56, %v333_v55 }
 0x2de   :  { %v336_v60 = vmul.f32 0.125, %v335_v58 }
 0x2e0   :  { %v430_v0 = vadd.f32 %v429_v63, %v336_v60 }
 0x2e2   :  { %432 = vst.msk [vmem:[#allocation2] sm:$0x1] %vm431_vm1, %v430_v0 }
 0x2e3   :  { %550 = shalt.err (!%p547_p4)
}
 0x2e4   :  { %s551_s5 = scalar_lea.hbm %s688_s4, 16 }
 0x2e5   :  { %p552_p5 = scmp.ne.s32.totalorder %s688_s4, %s551_s5  ;;  %p555_p6 = scmp.lt.u32.totalorder %s551_s5, %s688_s4 }
 0x2e7   :  { %p557_p7 = pnand %p555_p6, %p552_p5 }
 0x2e9   :  { %560 = shalt.err (!%p557_p7)
}
 0x2ea   :  { %442 = dma.vmem_to_hbm [thread:$0]  %s440_s26, 16, %s688_s4, [#allocation3]  }
 0x2eb   :  { %561 = dma.done.wait [#allocation3], 16  }
 0x2ec   :  { %562 = vsyncadd [#allocation3], 4294967280 }
 0x2ed   :  { %446 = vsyncpa [#allocation3], 1 }

</bundles_post_ra>
